<compile_context>
chip_gen: v6e
topology: v6e:2x2x1
jax: 0.10.0
libtpu: 0.0.40
codegen_flags: <defaults>
</compile_context>

<pallas_src>
import jax
import jax.numpy as jnp
import numpy as np
from jax.experimental import pallas as pl
from jax.experimental.pallas import tpu as pltpu


# ----------------------------- Pallas kernel -----------------------------

def _encoder_kernel(tok_ref, bd_emb_ref, bd_win_ref, bd_wom_ref, bd_woq_ref,
                    mask_ref, sseg_ref, conv_w_ref, bd_wlin_ref, b_eff_ref,
                    out_ref):
    tok = tok_ref[...]                                   # [Gt*L, P] int32
    GtL, P = tok.shape
    L = conv_w_ref.shape[0]
    Gt = GtL // L
    PV, PD = bd_emb_ref.shape
    V = PV // P
    PL = sseg_ref.shape[0]

    # ---- fused embedding gather: one-hot @ block-diag(emb_table), K = P*V ----
    iota_v = jax.lax.broadcasted_iota(jnp.int32, (GtL, V), 1)
    onehot = jnp.concatenate(
        [jnp.where(tok[:, j:j + 1] == iota_v, 1.0, 0.0) for j in range(P)],
        axis=1)                                          # [Gt*L, P*V]
    emb2 = jnp.dot(onehot, bd_emb_ref[...],
                   preferred_element_type=jnp.float32)   # [Gt*L, P*D]

    # ---- Attention ('general'): q = emb @ W_in (block-diag, K=N=P*D) ----
    q2 = jnp.dot(emb2, bd_win_ref[...],
                 preferred_element_type=jnp.float32)     # [Gt*L, P*D]
    emb_pk = emb2.reshape(Gt, L, PD)
    q_pk = q2.reshape(Gt, L, PD)

    # Block-diagonal context: ctx[g, j*L+m, :] = emb_pk[g, m, :] masked to
    # lane-group j -> one tensor serves both the scores and the mix matmuls.
    ctx = (jnp.concatenate([emb_pk] * P, axis=1)
           * mask_ref[...][None, :, :])                  # [Gt, P*L, P*D]

    # scores[g, l, j*L+m] = <q[gP+j, l, :], emb[gP+j, m, :]>   (K = P*D = 128)
    scores = jnp.einsum('gld,gnd->gln', q_pk, ctx,
                        preferred_element_type=jnp.float32)   # [Gt, L, P*L]
    # Softmax within each L-wide lane group.  Subtracting the 32-lane row max
    # (a constant per (g,l)) leaves every group's softmax unchanged and keeps
    # exp() bounded.
    scores = scores - jnp.max(scores, axis=-1, keepdims=True)
    p = jnp.exp(scores)
    # Per-group denominator broadcast back to all lanes via a segment-sum matmul.
    denom = jnp.dot(p.reshape(GtL, PL), sseg_ref[...],
                    preferred_element_type=jnp.float32)
    denom = jnp.maximum(denom, jnp.finfo(jnp.float32).tiny)   # padded-group guard
    w = p * pl.reciprocal(denom.reshape(Gt, L, PL), approx=True)

    # mix[g, l, j*D+d] = sum_m w[gP+j, l, m] * emb[gP+j, m, d]
    mix = jnp.einsum('gln,gnd->gld', w, ctx,
                     preferred_element_type=jnp.float32)      # [Gt, L, P*D]

    # linear_out(cat([mix, q], -1)) with block-diag halves of W_out, then tanh.
    attend = jnp.tanh(
        jnp.dot(mix.reshape(GtL, PD), bd_wom_ref[...],
                preferred_element_type=jnp.float32)
        + jnp.dot(q2, bd_woq_ref[...],
                  preferred_element_type=jnp.float32))        # [Gt*L, P*D]

    # Conv2d(1, 1, (L, 1)): weighted sum over sequence positions (VPU + reduce).
    conv = jnp.sum(attend.reshape(Gt, L, PD) * conv_w_ref[...][None, :, :],
                   axis=1)                                    # [Gt, P*D]

    # TODO(synk): Dropout is identity in eval mode; no stochastic mask applied.

    # Final Linear (block-diag); conv bias + linear bias pre-folded into b_eff.
    out_ref[...] = (jnp.dot(conv, bd_wlin_ref[...],
                            preferred_element_type=jnp.float32)
                    + b_eff_ref[...])                         # [Gt, P*F]


# ------------------------------- wrapper ----------------------------------

def encoder_forward(x_tokens, params, *, batch_tile=512):
    emb_table = params["emb_table"].astype(jnp.float32)   # [V, D], row 0 zeroed
    V, D = emb_table.shape
    B, L = x_tokens.shape
    F = params["b_lin"].shape[-1]

    # Pack P batch elements per 128-lane group (P*D = 128 when D = 32).
    P = max(1, 128 // D)

    # Batch tiling: Gt groups (= P*Gt batch rows) per grid step.
    groups = pl.cdiv(B, P)
    Gt = min(groups, max(1, batch_tile // P))
    # TODO(synk): on v7x choose Gt so the grid length is >= 2 (two TensorCores);
    # a single-step grid leaves one core idle.
    nb = pl.cdiv(groups, Gt)
    groups_pad = nb * Gt
    B_pad = groups_pad * P

    # Tokens padded with id 0 (padding row) and re-laid out as [groups*L, P].
    tok = jnp.pad(x_tokens.astype(jnp.int32), ((0, B_pad - B), (0, 0)))
    tok_pk = (tok.reshape(groups_pad, P, L)
                 .transpose(0, 2, 1)
                 .reshape(groups_pad * L, P))

    # Block-diagonal weights (built once; at most 128x128 each).
    # TODO(synk): for large vocabularies, gather outside the kernel (or use a
    # scalar-prefetch / DMA row-gather path) instead of the one-hot matmul.
    eye = jnp.eye(P, dtype=jnp.float32)
    bd_emb = jnp.kron(eye, emb_table)                      # [P*V, P*D]
    bd_win = jnp.kron(eye, params["w_in"])                 # [P*D, P*D]
    bd_wom = jnp.kron(eye, params["w_out"][:D])            # mix half of W_out
    bd_woq = jnp.kron(eye, params["w_out"][D:])            # query half of W_out
    bd_wlin = jnp.kron(eye, params["w_lin"])               # [P*D, P*F]

    # Fold biases: (conv + cb) @ W + b == conv @ W + (cb * W.sum(0) + b).
    cb = params["conv_b"].reshape(())
    b_eff = cb * params["w_lin"].sum(axis=0) + params["b_lin"].reshape(F)
    b_eff_pk = jnp.tile(b_eff, P).reshape(1, P * F)

    conv_w_col = params["conv_w"].reshape(L, 1)

    # Lane-group mask (keeps packed batch elements separate) and the
    # segment-sum matrix that broadcasts per-group softmax denominators.
    rows = jnp.arange(P * L)[:, None] // L
    mask = (rows == (jnp.arange(P * D)[None, :] // D)).astype(jnp.float32)  # [P*L, P*D]
    sseg = (rows == (jnp.arange(P * L)[None, :] // L)).astype(jnp.float32)  # [P*L, P*L]

    out = pl.pallas_call(
        _encoder_kernel,
        out_shape=jax.ShapeDtypeStruct((groups_pad, P * F), jnp.float32),
        grid_spec=pltpu.PrefetchScalarGridSpec(
            num_scalar_prefetch=0,
            grid=(nb,),
            in_specs=[
                pl.BlockSpec((Gt * L, P), lambda b: (b, 0)),      # packed tokens
                pl.BlockSpec((P * V, P * D), lambda b: (0, 0)),   # block-diag emb table
                pl.BlockSpec((P * D, P * D), lambda b: (0, 0)),   # block-diag W_in
                pl.BlockSpec((P * D, P * D), lambda b: (0, 0)),   # block-diag W_out[:D]
                pl.BlockSpec((P * D, P * D), lambda b: (0, 0)),   # block-diag W_out[D:]
                pl.BlockSpec((P * L, P * D), lambda b: (0, 0)),   # lane-group mask
                pl.BlockSpec((P * L, P * L), lambda b: (0, 0)),   # segment-sum matrix
                pl.BlockSpec((L, 1), lambda b: (0, 0)),           # conv weight column
                pl.BlockSpec((P * D, P * F), lambda b: (0, 0)),   # block-diag final linear
                pl.BlockSpec((1, P * F), lambda b: (0, 0)),       # folded bias
            ],
            out_specs=pl.BlockSpec((Gt, P * F), lambda b: (b, 0)),
        ),
        compiler_params=pltpu.CompilerParams(
            dimension_semantics=("parallel",)),
    )(tok_pk, bd_emb, bd_win, bd_wom, bd_woq, mask, sseg,
      conv_w_col, bd_wlin, b_eff_pk)

    # Un-pack (groups, P*F) -> (B, F); pure reshape, no data rearrangement.
    return out.reshape(B_pad, F)[:B]


# ---------------------------- pure-JAX reference ---------------------------

def encoder_ref(x_tokens, params):
    emb = params["emb_table"][x_tokens]                              # [B, L, D]
    q = jnp.einsum("bld,de->ble", emb, params["w_in"])
    scores = jnp.einsum("ble,bme->blm", q, emb)
    w = jax.nn.softmax(scores, axis=-1)
    mix = jnp.einsum("blm,bmd->bld", w, emb)
    combined = jnp.concatenate([mix, q], axis=-1)
    attend = jnp.tanh(jnp.einsum("blc,cd->bld", combined, params["w_out"]))
    conv = jnp.einsum("l,bld->bd", params["conv_w"][0], attend) + params["conv_b"][0, 0]
    return jnp.einsum("bd,df->bf", conv, params["w_lin"]) + params["b_lin"][0]


# --------------------------------- main ------------------------------------

if __name__ == "__main__":
    # Small shapes consistent with the module
    VOCAB, SEQ_LEN, EMB_DIM, FEAT_DIM = 32, 8, 32, 16
    BATCH = 2

    key = jax.random.PRNGKey(0)
    k_emb, k_in, k_out, k_cw, k_cb, k_lw, k_lb, k_x = jax.random.split(key, 8)

    # Deterministic parameter init (synthetic; shapes from Encoder.__init__)
    emb_table = jax.random.normal(k_emb, (VOCAB, EMB_DIM), jnp.float32) * 0.1
    emb_table = emb_table.at[0].set(0.0)                         # padding_idx=0

    params = {
        "emb_table": emb_table,
        # Attention.linear_in: Linear(D, D, bias=False); stored as right-multiply matrix
        "w_in": jax.random.normal(k_in, (EMB_DIM, EMB_DIM), jnp.float32) * 0.1,
        # Attention.linear_out: Linear(2D, D, bias=False); stored as [2D, D]
        "w_out": jax.random.normal(k_out, (2 * EMB_DIM, EMB_DIM), jnp.float32) * 0.1,
        # Conv2d(1, 1, kernel_size=(SEQ_LEN, 1)): weight [1,1,L,1] -> [1, L], bias scalar
        "conv_w": jax.random.normal(k_cw, (1, SEQ_LEN), jnp.float32) * 0.1,
        "conv_b": jax.random.normal(k_cb, (1, 1), jnp.float32) * 0.1,
        # Linear(emb_dim, feature_dim) with bias; stored as [D, F] and [1, F]
        "w_lin": jax.random.normal(k_lw, (EMB_DIM, FEAT_DIM), jnp.float32) * 0.1,
        "b_lin": jax.random.normal(k_lb, (1, FEAT_DIM), jnp.float32) * 0.1,
    }

    # Integer token inputs, with some zeros to exercise the padding row
    x = jax.random.randint(k_x, (BATCH, SEQ_LEN), 0, VOCAB, dtype=jnp.int32)

    out = encoder_forward(x, params)
    out = jax.block_until_ready(out)

    ref = jax.block_until_ready(encoder_ref(x, params))
    np.testing.assert_allclose(np.asarray(out), np.asarray(ref),
                               rtol=1e-2, atol=1e-2)
    assert out.shape == (BATCH, FEAT_DIM)
    print("KERNEL_OK")
</pallas_src>

<mosaic_0001>
module attributes {stable_mosaic.version = 11 : i64} {
  func.func @_encoder_kernel(%arg0: i32, %arg1: memref<8x4xi32, #tpu.memory_space<vmem>>, %arg2: memref<128x128xf32, #tpu.memory_space<vmem>>, %arg3: memref<128x128xf32, #tpu.memory_space<vmem>>, %arg4: memref<128x128xf32, #tpu.memory_space<vmem>>, %arg5: memref<128x128xf32, #tpu.memory_space<vmem>>, %arg6: memref<32x128xf32, #tpu.memory_space<vmem>>, %arg7: memref<32x32xf32, #tpu.memory_space<vmem>>, %arg8: memref<8x1xf32, #tpu.memory_space<vmem>>, %arg9: memref<128x64xf32, #tpu.memory_space<vmem>>, %arg10: memref<1x64xf32, #tpu.memory_space<vmem>>, %arg11: memref<1x64xf32, #tpu.memory_space<vmem>>) attributes {dimension_semantics = [#tpu.dimension_semantics<parallel>], iteration_bounds = array<i64: 1>, scalar_prefetch = 0 : i64, scratch_operands = 0 : i64, tpu.core_type = #tpu.core_type<tc>, window_params = [{transform_indices = @transform_0, window_bounds = array<i64: 8, 4>}, {pipeline_mode = #tpu.pipeline_mode<synchronous>, transform_indices = @transform_1, window_bounds = array<i64: 128, 128>}, {pipeline_mode = #tpu.pipeline_mode<synchronous>, transform_indices = @transform_2, window_bounds = array<i64: 128, 128>}, {pipeline_mode = #tpu.pipeline_mode<synchronous>, transform_indices = @transform_3, window_bounds = array<i64: 128, 128>}, {pipeline_mode = #tpu.pipeline_mode<synchronous>, transform_indices = @transform_4, window_bounds = array<i64: 128, 128>}, {pipeline_mode = #tpu.pipeline_mode<synchronous>, transform_indices = @transform_5, window_bounds = array<i64: 32, 128>}, {pipeline_mode = #tpu.pipeline_mode<synchronous>, transform_indices = @transform_6, window_bounds = array<i64: 32, 32>}, {pipeline_mode = #tpu.pipeline_mode<synchronous>, transform_indices = @transform_7, window_bounds = array<i64: 8, 1>}, {pipeline_mode = #tpu.pipeline_mode<synchronous>, transform_indices = @transform_8, window_bounds = array<i64: 128, 64>}, {pipeline_mode = #tpu.pipeline_mode<synchronous>, transform_indices = @transform_9, window_bounds = array<i64: 1, 64>}, {transform_indices = @transform_10, window_bounds = array<i64: 1, 64>}]} {
    %c0 = arith.constant 0 : index
    %c0_0 = arith.constant 0 : index
    %0 = vector.load %arg1[%c0, %c0_0] : memref<8x4xi32, #tpu.memory_space<vmem>>, vector<8x4xi32>
    %1 = tpu.iota {dimensions = array<i32: 1>} : vector<8x32xi32>
    %2 = vector.extract_strided_slice %0 {offsets = [0, 0], sizes = [8, 1], strides = [1, 1]} : vector<8x4xi32> to vector<8x1xi32>
    %3 = vector.broadcast %2 : vector<8x1xi32> to vector<8x32xi32>
    %4 = arith.cmpi eq, %3, %1 : vector<8x32xi32>
    %cst = arith.constant 1.000000e+00 : f32
    %cst_1 = arith.constant 0.000000e+00 : f32
    %5 = vector.broadcast %cst : f32 to vector<8x32xf32>
    %6 = vector.broadcast %cst_1 : f32 to vector<8x32xf32>
    %7 = arith.select %4, %5, %6 : vector<8x32xi1>, vector<8x32xf32>
    %8 = vector.extract_strided_slice %0 {offsets = [0, 1], sizes = [8, 1], strides = [1, 1]} : vector<8x4xi32> to vector<8x1xi32>
    %9 = vector.broadcast %8 : vector<8x1xi32> to vector<8x32xi32>
    %10 = arith.cmpi eq, %9, %1 : vector<8x32xi32>
    %cst_2 = arith.constant 1.000000e+00 : f32
    %cst_3 = arith.constant 0.000000e+00 : f32
    %11 = vector.broadcast %cst_2 : f32 to vector<8x32xf32>
    %12 = vector.broadcast %cst_3 : f32 to vector<8x32xf32>
    %13 = arith.select %10, %11, %12 : vector<8x32xi1>, vector<8x32xf32>
    %14 = vector.extract_strided_slice %0 {offsets = [0, 2], sizes = [8, 1], strides = [1, 1]} : vector<8x4xi32> to vector<8x1xi32>
    %15 = vector.broadcast %14 : vector<8x1xi32> to vector<8x32xi32>
    %16 = arith.cmpi eq, %15, %1 : vector<8x32xi32>
    %cst_4 = arith.constant 1.000000e+00 : f32
    %cst_5 = arith.constant 0.000000e+00 : f32
    %17 = vector.broadcast %cst_4 : f32 to vector<8x32xf32>
    %18 = vector.broadcast %cst_5 : f32 to vector<8x32xf32>
    %19 = arith.select %16, %17, %18 : vector<8x32xi1>, vector<8x32xf32>
    %20 = vector.extract_strided_slice %0 {offsets = [0, 3], sizes = [8, 1], strides = [1, 1]} : vector<8x4xi32> to vector<8x1xi32>
    %21 = vector.broadcast %20 : vector<8x1xi32> to vector<8x32xi32>
    %22 = arith.cmpi eq, %21, %1 : vector<8x32xi32>
    %cst_6 = arith.constant 1.000000e+00 : f32
    %cst_7 = arith.constant 0.000000e+00 : f32
    %23 = vector.broadcast %cst_6 : f32 to vector<8x32xf32>
    %24 = vector.broadcast %cst_7 : f32 to vector<8x32xf32>
    %25 = arith.select %22, %23, %24 : vector<8x32xi1>, vector<8x32xf32>
    %26 = tpu.concatenate %7, %13, %19, %25 in 1 : vector<8x32xf32>, vector<8x32xf32>, vector<8x32xf32>, vector<8x32xf32> -> vector<8x128xf32>
    %c0_8 = arith.constant 0 : index
    %c0_9 = arith.constant 0 : index
    %27 = vector.load %arg2[%c0_8, %c0_9] : memref<128x128xf32, #tpu.memory_space<vmem>>, vector<128x128xf32>
    %cst_10 = arith.constant dense<0.000000e+00> : vector<8x128xf32>
    %28 = tpu.matmul %26, %27, %cst_10 {dimension_numbers = #tpu.dot_dimension_numbers<[1], [0], [0], [1], [0, 0, 1, 1], [], []>} : vector<8x128xf32>, vector<128x128xf32>, vector<8x128xf32> -> vector<8x128xf32>
    %c0_11 = arith.constant 0 : index
    %c0_12 = arith.constant 0 : index
    %29 = vector.load %arg3[%c0_11, %c0_12] : memref<128x128xf32, #tpu.memory_space<vmem>>, vector<128x128xf32>
    %cst_13 = arith.constant dense<0.000000e+00> : vector<8x128xf32>
    %30 = tpu.matmul %28, %29, %cst_13 {dimension_numbers = #tpu.dot_dimension_numbers<[1], [0], [0], [1], [0, 0, 1, 1], [], []>} : vector<8x128xf32>, vector<128x128xf32>, vector<8x128xf32> -> vector<8x128xf32>
    %31 = vector.shape_cast %28 : vector<8x128xf32> to vector<1x8x128xf32>
    %32 = vector.shape_cast %30 : vector<8x128xf32> to vector<1x8x128xf32>
    %33 = tpu.concatenate %31, %31, %31, %31 in 1 : vector<1x8x128xf32>, vector<1x8x128xf32>, vector<1x8x128xf32>, vector<1x8x128xf32> -> vector<1x32x128xf32>
    %c0_14 = arith.constant 0 : index
    %c0_15 = arith.constant 0 : index
    %34 = vector.load %arg6[%c0_14, %c0_15] : memref<32x128xf32, #tpu.memory_space<vmem>>, vector<32x128xf32>
    %35 = vector.shape_cast %34 : vector<32x128xf32> to vector<1x32x128xf32>
    %36 = arith.mulf %33, %35 : vector<1x32x128xf32>
    "tpu.trace_start"() <{level = 10 : i32, message = "gld,gnd->gln"}> : () -> ()
    %cst_16 = arith.constant dense<0.000000e+00> : vector<1x8x32xf32>
    %37 = tpu.matmul %32, %36, %cst_16 {dimension_numbers = #tpu.dot_dimension_numbers<[2], [2], [1], [1], [0, 0, 0, 1, 1, 1], [0], [0]>} : vector<1x8x128xf32>, vector<1x32x128xf32>, vector<1x8x32xf32> -> vector<1x8x32xf32>
    "tpu.trace_stop"() : () -> ()
    %cst_17 = arith.constant dense<0xFF800000> : vector<1x8xf32>
    %38 = vector.multi_reduction <maximumf>, %37, %cst_17 [2] : vector<1x8x32xf32> to vector<1x8xf32>
    %39 = vector.shape_cast %38 : vector<1x8xf32> to vector<1x8x1xf32>
    %40 = vector.broadcast %39 : vector<1x8x1xf32> to vector<1x8x32xf32>
    %41 = arith.subf %37, %40 : vector<1x8x32xf32>
    %42 = math.exp %41 : vector<1x8x32xf32>
    %43 = vector.shape_cast %42 : vector<1x8x32xf32> to vector<8x32xf32>
    %c0_18 = arith.constant 0 : index
    %c0_19 = arith.constant 0 : index
    %44 = vector.load %arg7[%c0_18, %c0_19] : memref<32x32xf32, #tpu.memory_space<vmem>>, vector<32x32xf32>
    %cst_20 = arith.constant dense<0.000000e+00> : vector<8x32xf32>
    %45 = tpu.matmul %43, %44, %cst_20 {dimension_numbers = #tpu.dot_dimension_numbers<[1], [0], [0], [1], [0, 0, 1, 1], [], []>} : vector<8x32xf32>, vector<32x32xf32>, vector<8x32xf32> -> vector<8x32xf32>
    %cst_21 = arith.constant 1.17549435E-38 : f32
    %46 = vector.broadcast %cst_21 : f32 to vector<8x32xf32>
    %47 = arith.maximumf %45, %46 : vector<8x32xf32>
    %48 = vector.shape_cast %47 : vector<8x32xf32> to vector<1x8x32xf32>
    %49 = tpu.reciprocal %48 {approx = true} : vector<1x8x32xf32> -> vector<1x8x32xf32>
    %50 = arith.mulf %42, %49 : vector<1x8x32xf32>
    "tpu.trace_start"() <{level = 10 : i32, message = "gln,gnd->gld"}> : () -> ()
    %cst_22 = arith.constant dense<0.000000e+00> : vector<1x8x128xf32>
    %51 = tpu.matmul %50, %36, %cst_22 {dimension_numbers = #tpu.dot_dimension_numbers<[2], [1], [1], [2], [0, 0, 0, 1, 1, 2], [0], [0]>} : vector<1x8x32xf32>, vector<1x32x128xf32>, vector<1x8x128xf32> -> vector<1x8x128xf32>
    "tpu.trace_stop"() : () -> ()
    %52 = vector.shape_cast %51 : vector<1x8x128xf32> to vector<8x128xf32>
    %c0_23 = arith.constant 0 : index
    %c0_24 = arith.constant 0 : index
    %53 = vector.load %arg4[%c0_23, %c0_24] : memref<128x128xf32, #tpu.memory_space<vmem>>, vector<128x128xf32>
    %cst_25 = arith.constant dense<0.000000e+00> : vector<8x128xf32>
    %54 = tpu.matmul %52, %53, %cst_25 {dimension_numbers = #tpu.dot_dimension_numbers<[1], [0], [0], [1], [0, 0, 1, 1], [], []>} : vector<8x128xf32>, vector<128x128xf32>, vector<8x128xf32> -> vector<8x128xf32>
    %c0_26 = arith.constant 0 : index
    %c0_27 = arith.constant 0 : index
    %55 = vector.load %arg5[%c0_26, %c0_27] : memref<128x128xf32, #tpu.memory_space<vmem>>, vector<128x128xf32>
    %cst_28 = arith.constant dense<0.000000e+00> : vector<8x128xf32>
    %56 = tpu.matmul %30, %55, %cst_28 {dimension_numbers = #tpu.dot_dimension_numbers<[1], [0], [0], [1], [0, 0, 1, 1], [], []>} : vector<8x128xf32>, vector<128x128xf32>, vector<8x128xf32> -> vector<8x128xf32>
    %57 = arith.addf %54, %56 : vector<8x128xf32>
    %58 = math.tanh %57 : vector<8x128xf32>
    %59 = vector.shape_cast %58 : vector<8x128xf32> to vector<1x8x128xf32>
    %c0_29 = arith.constant 0 : index
    %c0_30 = arith.constant 0 : index
    %60 = vector.load %arg8[%c0_29, %c0_30] : memref<8x1xf32, #tpu.memory_space<vmem>>, vector<8x1xf32>
    %61 = vector.shape_cast %60 : vector<8x1xf32> to vector<1x8x1xf32>
    %62 = vector.broadcast %61 : vector<1x8x1xf32> to vector<1x8x128xf32>
    %63 = arith.mulf %59, %62 : vector<1x8x128xf32>
    %cst_31 = arith.constant dense<0.000000e+00> : vector<1x128xf32>
    %64 = vector.multi_reduction <add>, %63, %cst_31 [1] : vector<1x8x128xf32> to vector<1x128xf32>
    %c0_32 = arith.constant 0 : index
    %c0_33 = arith.constant 0 : index
    %65 = vector.load %arg9[%c0_32, %c0_33] : memref<128x64xf32, #tpu.memory_space<vmem>>, vector<128x64xf32>
    %cst_34 = arith.constant dense<0.000000e+00> : vector<1x64xf32>
    %66 = tpu.matmul %64, %65, %cst_34 {dimension_numbers = #tpu.dot_dimension_numbers<[1], [0], [0], [1], [0, 0, 1, 1], [], []>} : vector<1x128xf32>, vector<128x64xf32>, vector<1x64xf32> -> vector<1x64xf32>
    %c0_35 = arith.constant 0 : index
    %c0_36 = arith.constant 0 : index
    %67 = vector.load %arg10[%c0_35, %c0_36] : memref<1x64xf32, #tpu.memory_space<vmem>>, vector<1x64xf32>
    %68 = arith.addf %66, %67 : vector<1x64xf32>
    %c0_37 = arith.constant 0 : index
    %c0_38 = arith.constant 0 : index
    %69 = vector.load %arg11[%c0_37, %c0_38] : memref<1x64xf32, #tpu.memory_space<vmem>>, vector<1x64xf32>
    tpu.vector_store %arg11[%c0_37, %c0_38], %68 {strides = array<i32>} : memref<1x64xf32, #tpu.memory_space<vmem>>, vector<1x64xf32>,
    return
  }
  func.func @transform_0(%arg0: i32) -> (i32, i32) {
    %c0_i32 = arith.constant 0 : i32
    %c0_i32_0 = arith.constant 0 : i32
    return %arg0, %c0_i32 : i32, i32
  }
  func.func @transform_1(%arg0: i32) -> (i32, i32) {
    %c0_i32 = arith.constant 0 : i32
    %c0_i32_0 = arith.constant 0 : i32
    %c0_i32_1 = arith.constant 0 : i32
    return %c0_i32, %c0_i32_0 : i32, i32
  }
  func.func @transform_2(%arg0: i32) -> (i32, i32) {
    %c0_i32 = arith.constant 0 : i32
    %c0_i32_0 = arith.constant 0 : i32
    %c0_i32_1 = arith.constant 0 : i32
    return %c0_i32, %c0_i32_0 : i32, i32
  }
  func.func @transform_3(%arg0: i32) -> (i32, i32) {
    %c0_i32 = arith.constant 0 : i32
    %c0_i32_0 = arith.constant 0 : i32
    %c0_i32_1 = arith.constant 0 : i32
    return %c0_i32, %c0_i32_0 : i32, i32
  }
  func.func @transform_4(%arg0: i32) -> (i32, i32) {
    %c0_i32 = arith.constant 0 : i32
    %c0_i32_0 = arith.constant 0 : i32
    %c0_i32_1 = arith.constant 0 : i32
    return %c0_i32, %c0_i32_0 : i32, i32
  }
  func.func @transform_5(%arg0: i32) -> (i32, i32) {
    %c0_i32 = arith.constant 0 : i32
    %c0_i32_0 = arith.constant 0 : i32
    %c0_i32_1 = arith.constant 0 : i32
    return %c0_i32, %c0_i32_0 : i32, i32
  }
  func.func @transform_6(%arg0: i32) -> (i32, i32) {
    %c0_i32 = arith.constant 0 : i32
    %c0_i32_0 = arith.constant 0 : i32
    %c0_i32_1 = arith.constant 0 : i32
    return %c0_i32, %c0_i32_0 : i32, i32
  }
  func.func @transform_7(%arg0: i32) -> (i32, i32) {
    %c0_i32 = arith.constant 0 : i32
    %c0_i32_0 = arith.constant 0 : i32
    %c0_i32_1 = arith.constant 0 : i32
    return %c0_i32, %c0_i32_0 : i32, i32
  }
  func.func @transform_8(%arg0: i32) -> (i32, i32) {
    %c0_i32 = arith.constant 0 : i32
    %c0_i32_0 = arith.constant 0 : i32
    %c0_i32_1 = arith.constant 0 : i32
    return %c0_i32, %c0_i32_0 : i32, i32
  }
  func.func @transform_9(%arg0: i32) -> (i32, i32) {
    %c0_i32 = arith.constant 0 : i32
    %c0_i32_0 = arith.constant 0 : i32
    %c0_i32_1 = arith.constant 0 : i32
    return %c0_i32, %c0_i32_0 : i32, i32
  }
  func.func @transform_10(%arg0: i32) -> (i32, i32) {
    %c0_i32 = arith.constant 0 : i32
    %c0_i32_0 = arith.constant 0 : i32
    return %arg0, %c0_i32 : i32, i32
  }
}

</mosaic_0001>

<bundles_post_ra>
// kernel: tpu_custom_call.1
= control target key start
LH: loop header
LB: loop body
LE: loop exit
PB: predicated region body
PF: predicated region fallthrough
CT: control target
= control target key end

     0   :  { %15 = vsyncpa [#allocation3], 0  ;;  %s1576_s0 = inlined_call_operand.vmem [shape: s32[8,4], index: 0, kind: input, shape index: {}]   ;;  %s1577_s1 = inlined_call_operand.vmem [shape: f32[128,128], index: 1, kind: input, shape index: {}]   ;;  %s1578_s2 = inlined_call_operand.hbm [shape: f32[128,128], index: 2, kind: input, shape index: {}]   ;;  %s1579_s3 = inlined_call_operand.hbm [shape: f32[128,128], index: 3, kind: input, shape index: {}]   ;;  %s1580_s4 = inlined_call_operand.hbm [shape: f32[128,128], index: 4, kind: input, shape index: {}]   ;;  %s1581_s5 = inlined_call_operand.vmem [shape: f32[32,128], index: 5, kind: input, shape index: {}]   ;;  %s1582_s6 = inlined_call_operand.vmem [shape: f32[32,32], index: 6, kind: input, shape index: {}]   ;;  %s1583_s7 = inlined_call_operand.vmem [shape: f32[8,1], index: 7, kind: input, shape index: {}]   ;;  %s1584_s8 = inlined_call_operand.vmem [shape: f32[128,64], index: 8, kind: input, shape index: {}]   ;;  %s1585_s9 = inlined_call_operand.vmem [shape: f32[1,64], index: 9, kind: input, shape index: {}]   ;;  %s1586_s10 = inlined_call_operand.hbm [shape: f32[1,64], index: 10, kind: output, shape index: {}]  }
   0x1   :  { %16 = vsyncpa [#allocation6], 0 }
   0x2   :  { %17 = vsyncpa [#allocation4], 0  ;;  %s1240_s13 = smov [#allocation5]   ;;  %s1241_s15 = smov [#allocation2]  }
   0x3   :  { %s39_s14 = sshll.u32 %s1240_s13, 4  ;;  %s27_s16 = sshll.u32 %s1241_s15, 4  ;;  %s40_s14 = int_to_ptr.vmem [resolvable:$true] %s39_s14  ;;  %s28_s16 = int_to_ptr.vmem [resolvable:$true] %s27_s16 }
   0x4   :  { %s1162_s17 = scalar_lea.vmem %s40_s14, 2048  ;;  %p1167_p1 = scmp.lt.s32.totalorder %s40_s14, %s40_s14 }
   0x5   :  { %p1163_p0 = scmp.ne.s32.totalorder %s40_s14, %s1162_s17  ;;  %p1168_p2 = scmp.lt.s32.totalorder %s1162_s17, %s1162_s17 }
   0x7   :  { %p1169_p3 = por %p1168_p2, %p1167_p1 }
   0x9   :  { %p1170_p4 = pnand %p1169_p3, %p1163_p0 }
   0xb   :  { %1173 = shalt.err (!%p1170_p4)
}
   0xc   :  { %s1242_s18 = smov 128   ;;  %s1243_s19 = smov 8  }
   0xd   :  { %45 = dma.hbm_to_vmem [thread:$0]  %s1579_s3, 2048, %s40_s14, [#allocation6], %s1242_s18, %s1242_s18, %s1243_s19  }
   0xe   :  { %s1182_s22 = scalar_lea.vmem %s28_s16, 2048  ;;  %p1187_p6 = scmp.lt.s32.totalorder %s28_s16, %s28_s16 }
   0xf   :  { %p1183_p5 = scmp.ne.s32.totalorder %s28_s16, %s1182_s22  ;;  %p1188_p7 = scmp.lt.s32.totalorder %s1182_s22, %s1182_s22 }
  0x11   :  { %p1189_p8 = por %p1188_p7, %p1187_p6 }
  0x13   :  { %p1190_p9 = pnand %p1189_p8, %p1183_p5 }
  0x15   :  { %1193 = shalt.err (!%p1190_p9)
}
  0x16   :  { %33 = dma.hbm_to_vmem [thread:$0]  %s1578_s2, 2048, %s28_s16, [#allocation3], %s1242_s18, %s1242_s18, %s1243_s19  }
  0x17   :  { %s1244_s25 = smov [#allocation7]  }
  0x18   :  { %s51_s26 = sshll.u32 %s1244_s25, 4  ;;  %s52_s26 = int_to_ptr.vmem [resolvable:$true] %s51_s26 }
  0x19   :  { %s1202_s27 = scalar_lea.vmem %s52_s26, 2048  ;;  %p1207_p11 = scmp.lt.s32.totalorder %s52_s26, %s52_s26 }
  0x1a   :  { %p1203_p10 = scmp.ne.s32.totalorder %s52_s26, %s1202_s27  ;;  %p1208_p12 = scmp.lt.s32.totalorder %s1202_s27, %s1202_s27 }
  0x1c   :  { %p1209_p13 = por %p1208_p12, %p1207_p11 }
  0x1e   :  { %p1210_p0 = pnand %p1209_p13, %p1203_p10 }
  0x20   :  { %1213 = shalt.err (!%p1210_p0)
}
  0x21   :  { %57 = dma.hbm_to_vmem [thread:$0]  %s1580_s4, 2048, %s52_s26, [#allocation6], %s1242_s18, %s1242_s18, %s1243_s19  }
  0x22   :  { %1234 = dma.done.wait [#allocation3], 2048  }
  0x23   :  { %1235 = vsyncadd [#allocation3], 4294965248 }
  0x24   :  { %1236 = dma.done.wait [#allocation6], 4096  }
  0x25   :  { %1237 = vsyncadd [#allocation6], 4294963200  ;;  %v1245_v0 = vmov 1   ;;  %v1246_v1 = vmov 3   ;;  %v1247_v2 = vmov 0.0   ;;  %v77_v3 = vld [vmem:[%s1576_s0] sm:$0xff]  ;;  %v78_v21 = vlaneseq }
  0x26   :  { %1143 = vset.pattern.permute.xlu0 %v1245_v0  ;;  %1145 = vset.pattern.permute.xlu1 %v1246_v1  ;;  %v1248_v4 = vmov 2   ;;  %v1249_v5 = vmov 0   ;;  %v133_v6 = vld [vmem:[%s1577_s1 + $0x78] sm:$0xff]  ;;  %v132_v7 = vld [vmem:[%s1577_s1 + $0x70] sm:$0xff]  ;;  %v131_v8 = vld [vmem:[%s1577_s1 + $0x68] sm:$0xff]  ;;  %vm1250_vm0 = vmmov 0  }
  0x27   :  { %920 = vmatprep.subr.mxu0 %v1247_v2  ;;  %955 = vmatprep.subr.mxu1 %v1247_v2  ;;  %v130_v9 = vld [vmem:[%s1577_s1 + $0x60] sm:$0xff]  ;;  %v129_v10 = vld [vmem:[%s1577_s1 + $0x58] sm:$0xff]  ;;  %v128_v11 = vld [vmem:[%s1577_s1 + $0x50] sm:$0xff]  ;;  %v1389_v23 = vand.u32 127, %v78_v21  ;;  %s1252_s16 = smov 96   ;;  %s1253_s17 = smov 64  }
  0x28   :  { %86 = vperm.xlu0 %1143, %v77_v3   ;;  %96 = vperm.xlu1 %1145, %v77_v3   ;;  %v127_v12 = vld [vmem:[%s1577_s1 + $0x48] sm:$0xff]  ;;  %v126_v13 = vld [vmem:[%s1577_s1 + $0x40] sm:$0xff]  ;;  %v125_v14 = vld [vmem:[%s1577_s1 + $0x38] sm:$0xff]  ;;  %vm112_vm5 = vcmask 261120   ;;  %vm114_vm6 = vcmask 523264   ;;  %vm116_vm7 = vcmask 785408  }
  0x29   :  { %921 = vmatpush3.msra.mxu0 %v133_v6  ;;  %v124_v15 = vld [vmem:[%s1577_s1 + $0x30] sm:$0xff]  ;;  %v123_v16 = vld [vmem:[%s1577_s1 + $0x28] sm:$0xff]  ;;  %v122_v17 = vld [vmem:[%s1577_s1 + $0x20] sm:$0xff]  ;;  %952 = vmatprep.mubr.msk.f32.mxu0 %vm1250_vm0, %v1247_v2  ;;  %s1254_s14 = smov [#allocation8]   ;;  %vm800_vm8 = vcmask 516096  }
  0x2a   :  { %922 = vmatprep.subr.mxu0 %v1247_v2  ;;  %v121_v18 = vld [vmem:[%s1577_s1 + $0x18] sm:$0xff]  ;;  %v120_v19 = vld [vmem:[%s1577_s1 + $0x10] sm:$0xff]  ;;  %v119_v20 = vld [vmem:[%s1577_s1 + $0x8] sm:$0xff]  ;;  %987 = vmatprep.mubr.msk.f32.mxu1 %vm1250_vm0, %v1247_v2  ;;  %s808_s15 = sshll.u32 %s1254_s14, 4  ;;  %s809_s15 = int_to_ptr.vmem [resolvable:$true] %s808_s15 }
  0x2b   :  { %923 = vmatpush3.msra.mxu0 %v132_v7  ;;  %v118_v22 = vld [vmem:[%s1577_s1] sm:$0xff]  ;;  %s1251_s1 = smov 32   ;;  %v219_v29 = vld [vmem:[#allocation2 + $0x78] sm:$0xff]  ;;  %v218_v30 = vld [vmem:[#allocation2 + $0x70] sm:$0xff]  ;;  %p1219_p2 = scmp.lt.s32.totalorder %s809_s15, %s809_s15 }
  0x2c   :  { %1144 = vset.pattern.permute.xlu0 %v1248_v4  ;;  %1146 = vset.pattern.permute.xlu1 %v1249_v5  ;;  %v700_v32 = vld [vmem:[%s1583_s7] sm:$0xff]  ;;  %v217_v33 = vld [vmem:[#allocation2 + $0x68] sm:$0xff]  ;;  %v215_v35 = vld [vmem:[#allocation2 + $0x58] sm:$0xff] }
  0x2d   :  { %91 = vperm.xlu0 %1144, %v77_v3   ;;  %81 = vperm.xlu1 %1146, %v77_v3   ;;  %v216_v34 = vld [vmem:[#allocation2 + $0x60] sm:$0xff]  ;;  %v214_v36 = vld [vmem:[#allocation2 + $0x50] sm:$0xff]  ;;  %v213_v37 = vld [vmem:[#allocation2 + $0x48] sm:$0xff] }
  0x2e   :  { %924 = vmatprep.subr.mxu0 %v1247_v2  ;;  %956 = vmatpush3.msra.mxu1 %v219_v29  ;;  %v212_v38 = vld [vmem:[#allocation2 + $0x40] sm:$0xff]  ;;  %v211_v39 = vld [vmem:[#allocation2 + $0x38] sm:$0xff]  ;;  %v210_v40 = vld [vmem:[#allocation2 + $0x30] sm:$0xff] }
  0x2f   :  { %925 = vmatpush3.msra.mxu0 %v131_v8  ;;  %957 = vmatprep.subr.mxu1 %v1247_v2  ;;  %v209_v41 = vld [vmem:[#allocation2 + $0x28] sm:$0xff]  ;;  %v208_v42 = vld [vmem:[#allocation2 + $0x20] sm:$0xff]  ;;  %v207_v43 = vld [vmem:[#allocation2 + $0x18] sm:$0xff] }
  0x30   :  { %926 = vmatprep.subr.mxu0 %v1247_v2  ;;  %958 = vmatpush3.msra.mxu1 %v218_v30  ;;  %v206_v44 = vld [vmem:[#allocation2 + $0x10] sm:$0xff]  ;;  %v205_v45 = vld [vmem:[#allocation2 + $0x8] sm:$0xff]  ;;  %v204_v54 = vld [vmem:[#allocation2] sm:$0xff] }
  0x31   :  { %1147 = vset.pattern.permute.xlu0 %v1249_v5  ;;  %927 = vmatpush3.msra.mxu0 %v130_v9  ;;  %v558_v55 = vld [vmem:[#allocation7 + $0x78] sm:$0xff]  ;;  %v557_v56 = vld [vmem:[#allocation7 + $0x70] sm:$0xff]  ;;  %v556_v57 = vld [vmem:[#allocation7 + $0x68] sm:$0xff] }
  0x32   :  { %928 = vmatprep.subr.mxu0 %v1247_v2  ;;  %959 = vmatprep.subr.mxu1 %v1247_v2  ;;  %v555_v58 = vld [vmem:[#allocation7 + $0x60] sm:$0xff]  ;;  %v554_v59 = vld [vmem:[#allocation7 + $0x58] sm:$0xff]  ;;  %v553_v60 = vld [vmem:[#allocation7 + $0x50] sm:$0xff] }
  0x33   :  { %929 = vmatpush3.msra.mxu0 %v129_v10  ;;  %960 = vmatpush3.msra.mxu1 %v217_v33  ;;  %v552_v61 = vld [vmem:[#allocation7 + $0x48] sm:$0xff]  ;;  %v551_v62 = vld [vmem:[#allocation7 + $0x40] sm:$0xff]  ;;  %v550_v63 = vld [vmem:[#allocation7 + $0x38] sm:$0xff] }
  0x34   :  { %930 = vmatprep.subr.mxu0 %v1247_v2  ;;  %961 = vmatprep.subr.mxu1 %v1247_v2  ;;  %v549_v0 = vld [vmem:[#allocation7 + $0x30] sm:$0xff]  ;;  %v548_v1 = vld [vmem:[#allocation7 + $0x28] sm:$0xff]  ;;  %v547_v3 = vld [vmem:[#allocation7 + $0x20] sm:$0xff] }
  0x35   :  { %931 = vmatpush3.msra.mxu0 %v128_v11  ;;  %962 = vmatpush3.msra.mxu1 %v216_v34  ;;  %v546_v4 = vld [vmem:[#allocation7 + $0x18] sm:$0xff]  ;;  %v545_v5 = vld [vmem:[#allocation7 + $0x10] sm:$0xff]  ;;  %v544_v6 = vld [vmem:[#allocation7 + $0x8] sm:$0xff] }
  0x36   :  { %932 = vmatprep.subr.mxu0 %v1247_v2  ;;  %963 = vmatprep.subr.mxu1 %v1247_v2  ;;  %v293_v7 = vld [vmem:[%s1581_s5 + $0x18] sm:$0xff]  ;;  %v292_v11 = vld [vmem:[%s1581_s5 + $0x10] sm:$0xff] }
  0x37   :  { %933 = vmatpush3.msra.mxu0 %v127_v12  ;;  %964 = vmatpush3.msra.mxu1 %v215_v35 }
  0x38   :  { %934 = vmatprep.subr.mxu0 %v1247_v2  ;;  %965 = vmatprep.subr.mxu1 %v1247_v2 }
  0x39   :  { %935 = vmatpush3.msra.mxu0 %v126_v13  ;;  %966 = vmatpush3.msra.mxu1 %v214_v36  ;;  %v291_v13 = vld [vmem:[%s1581_s5 + $0x8] sm:$0xff] }
  0x3a   :  { %936 = vmatprep.subr.mxu0 %v1247_v2  ;;  %967 = vmatprep.subr.mxu1 %v1247_v2 }
  0x3b   :  { %937 = vmatpush3.msra.mxu0 %v125_v14  ;;  %968 = vmatpush3.msra.mxu1 %v213_v37 }
  0x3c   :  { %938 = vmatprep.subr.mxu0 %v1247_v2  ;;  %969 = vmatprep.subr.mxu1 %v1247_v2 }
  0x3d   :  { %939 = vmatpush3.msra.mxu0 %v124_v15  ;;  %970 = vmatpush3.msra.mxu1 %v212_v38  ;;  %v290_v15 = vld [vmem:[%s1581_s5] sm:$0xff]  ;;  %v542_v38 = vld [vmem:[#allocation5 + $0x78] sm:$0xff] }
  0x3e   :  { %940 = vmatprep.subr.mxu0 %v1247_v2  ;;  %971 = vmatprep.subr.mxu1 %v1247_v2 }
  0x3f   :  { %941 = vmatpush3.msra.mxu0 %v123_v16  ;;  %972 = vmatpush3.msra.mxu1 %v211_v39  ;;  %v541_v39 = vld [vmem:[#allocation5 + $0x70] sm:$0xff] }
  0x40   :  { %942 = vmatprep.subr.mxu0 %v1247_v2  ;;  %973 = vmatprep.subr.mxu1 %v1247_v2 }
  0x41   :  { %943 = vmatpush3.msra.mxu0 %v122_v17  ;;  %974 = vmatpush3.msra.mxu1 %v210_v40  ;;  %v543_v17 = vld [vmem:[#allocation7] sm:$0xff]  ;;  %v540_v40 = vld [vmem:[#allocation5 + $0x68] sm:$0xff] }
  0x42   :  { %944 = vmatprep.subr.mxu0 %v1247_v2  ;;  %975 = vmatprep.subr.mxu1 %v1247_v2 }
  0x43   :  { %945 = vmatpush3.msra.mxu0 %v121_v18  ;;  %976 = vmatpush3.msra.mxu1 %v209_v41  ;;  %v539_v41 = vld [vmem:[#allocation5 + $0x60] sm:$0xff] }
  0x44   :  { %946 = vmatprep.subr.mxu0 %v1247_v2  ;;  %977 = vmatprep.subr.mxu1 %v1247_v2 }
  0x45   :  { %947 = vmatpush3.msra.mxu0 %v120_v19  ;;  %978 = vmatpush3.msra.mxu1 %v208_v42  ;;  %v538_v42 = vld [vmem:[#allocation5 + $0x58] sm:$0xff] }
  0x46   :  { %948 = vmatprep.subr.mxu0 %v1247_v2  ;;  %979 = vmatprep.subr.mxu1 %v1247_v2 }
  0x47   :  { %949 = vmatpush3.msra.mxu0 %v119_v20  ;;  %980 = vmatpush3.msra.mxu1 %v207_v43  ;;  %v537_v43 = vld [vmem:[#allocation5 + $0x50] sm:$0xff] }
  0x48   :  { %950 = vmatprep.subr.mxu0 %v1247_v2  ;;  %981 = vmatprep.subr.mxu1 %v1247_v2 }
  0x49   :  { %951 = vmatpush3.msra.mxu0 %v118_v22  ;;  %982 = vmatpush3.msra.mxu1 %v206_v44  ;;  %v536_v44 = vld [vmem:[#allocation5 + $0x48] sm:$0xff] }
  0x4a   :  { %1023 = vmatprep.subr.mxu0 %v1247_v2  ;;  %983 = vmatprep.subr.mxu1 %v1247_v2 }
  0x4b   :  { %984 = vmatpush3.msra.mxu1 %v205_v45  ;;  %v535_v45 = vld [vmem:[#allocation5 + $0x40] sm:$0xff] }
  0x4c   :  { %985 = vmatprep.subr.mxu1 %v1247_v2 }
  0x4d   :  { %986 = vmatpush3.msra.mxu1 %v204_v54 }
  0x4e   :  { %990 = vmatprep.subr.mxu1 %v1247_v2 }
  0xa3   :  { %v87_v24 = vpop.permute.xlu0 %86  ;;  %v97_v25 = vpop.permute.xlu1 %96 }
  0xa4   :  { %vm88_vm1 = vcmp.eq.s32.totalorder %v87_v24, %v1389_v23  ;;  %vm98_vm2 = vcmp.eq.s32.totalorder %v97_v25, %v1389_v23  ;;  %v377_v25 = vld [vmem:[%s1582_s6 + $0x18] sm:$0xff] }
  0xa5   :  { %v89_v26 = vsel %vm88_vm1, 1.0, %v1247_v2  ;;  %v99_v27 = vsel %vm98_vm2, 1.0, %v1247_v2 }
  0xa6   :  { %101 = vrot.lane.b32.xlu1 %v89_v26, %s1251_s1  ;;  %v376_v26 = vld [vmem:[%s1582_s6 + $0x10] sm:$0xff]  ;;  %s1214_s1 = scalar_lea.vmem %s809_s15, 16 }
  0xa7   :  { %p1215_p1 = scmp.ne.s32.totalorder %s809_s15, %s1214_s1 }
  0xa8   :  { %v92_v28 = vpop.permute.xlu0 %91  ;;  %v82_v46 = vpop.permute.xlu1 %81 }
  0xa9   :  { %vm93_vm3 = vcmp.eq.s32.totalorder %v92_v28, %v1389_v23  ;;  %vm83_vm4 = vcmp.eq.s32.totalorder %v82_v46, %v1389_v23  ;;  %v374_v28 = vld [vmem:[%s1582_s6] sm:$0xff]  ;;  %v534_v46 = vld [vmem:[#allocation5 + $0x38] sm:$0xff] }
  0xaa   :  { %v94_v31 = vsel %vm93_vm3, 1.0, %v1247_v2  ;;  %109 = vrot.lane.b32.xlu1 %v99_v27, %s1252_s16  ;;  %v84_v48 = vsel %vm83_vm4, 1.0, %v1247_v2  ;;  %v375_v27 = vld [vmem:[%s1582_s6 + $0x8] sm:$0xff]  ;;  %s1218_s16 = scalar_lea.vmem %s809_s15, 32 }
  0xab   :  { %105 = vrot.lane.b32.xlu0 %v94_v31, %s1253_s17  ;;  %p1220_p3 = scmp.lt.s32.totalorder %s1218_s16, %s1214_s1 }
  0xad   :  { %p1221_p4 = por %p1220_p3, %p1219_p2 }
  0xae   :  { %703 = vperm.xlu1 %1146, %v700_v32  }
  0xaf   :  { %p1222_p5 = pnand %p1221_p4, %p1215_p1 }
 0x118   :  { %v102_v47 = vpop.permute.xlu1 %101 }
 0x119   :  { %v113_v50 = vsel %vm112_vm5, %v84_v48, %v102_v47  ;;  %v533_v47 = vld [vmem:[#allocation5 + $0x30] sm:$0xff]  ;;  %v532_v48 = vld [vmem:[#allocation5 + $0x28] sm:$0xff] }
 0x11c   :  { %v110_v49 = vpop.permute.xlu1 %109 }
 0x11d   :  { %v106_v51 = vpop.permute.xlu0 %105 }
 0x11e   :  { %v115_v52 = vsel %vm114_vm6, %v113_v50, %v106_v51  ;;  %v530_v50 = vld [vmem:[#allocation5 + $0x18] sm:$0xff]  ;;  %v529_v51 = vld [vmem:[#allocation5 + $0x10] sm:$0xff] }
 0x11f   :  { %v117_v53 = vsel %vm116_vm7, %v115_v52, %v110_v49  ;;  %v531_v49 = vld [vmem:[#allocation5 + $0x20] sm:$0xff]  ;;  %v528_v52 = vld [vmem:[#allocation5 + $0x8] sm:$0xff] }
 0x120   :  { %953 = vmatmul.mubr.f32.vlgmr.msra.gmra.mxu0 %v117_v53  ;;  %v527_v53 = vld [vmem:[#allocation5] sm:$0xff] }
 0x121   :  { %1055 = vmatprep.mubr.msk.f32.mxu0 %vm1250_vm0, %v1247_v2  ;;  %1024 = vmatpush3.msra.mxu0 %v558_v55 }
 0x122   :  { %1025 = vmatprep.subr.mxu0 %v1247_v2 }
 0x123   :  { %1026 = vmatpush3.msra.mxu0 %v557_v56  ;;  %v728_v56 = vld [vmem:[%s1584_s8 + $0x78] sm:$0xff] }
 0x124   :  { %1027 = vmatprep.subr.mxu0 %v1247_v2 }
 0x125   :  { %1028 = vmatpush3.msra.mxu0 %v556_v57  ;;  %v727_v57 = vld [vmem:[%s1584_s8 + $0x70] sm:$0xff] }
 0x126   :  { %1029 = vmatprep.subr.mxu0 %v1247_v2 }
 0x127   :  { %1030 = vmatpush3.msra.mxu0 %v555_v58  ;;  %v726_v58 = vld [vmem:[%s1584_s8 + $0x68] sm:$0xff] }
 0x128   :  { %1031 = vmatprep.subr.mxu0 %v1247_v2 }
 0x129   :  { %1032 = vmatpush3.msra.mxu0 %v554_v59  ;;  %v725_v59 = vld [vmem:[%s1584_s8 + $0x60] sm:$0xff] }
 0x12a   :  { %1033 = vmatprep.subr.mxu0 %v1247_v2 }
 0x12b   :  { %1034 = vmatpush3.msra.mxu0 %v553_v60  ;;  %v724_v60 = vld [vmem:[%s1584_s8 + $0x58] sm:$0xff] }
 0x12c   :  { %1035 = vmatprep.subr.mxu0 %v1247_v2 }
 0x12d   :  { %1036 = vmatpush3.msra.mxu0 %v552_v61  ;;  %v723_v61 = vld [vmem:[%s1584_s8 + $0x50] sm:$0xff] }
 0x12e   :  { %1037 = vmatprep.subr.mxu0 %v1247_v2 }
 0x12f   :  { %1038 = vmatpush3.msra.mxu0 %v551_v62  ;;  %v722_v62 = vld [vmem:[%s1584_s8 + $0x48] sm:$0xff] }
 0x130   :  { %1039 = vmatprep.subr.mxu0 %v1247_v2 }
 0x131   :  { %1040 = vmatpush3.msra.mxu0 %v550_v63  ;;  %v721_v63 = vld [vmem:[%s1584_s8 + $0x40] sm:$0xff] }
 0x132   :  { %1041 = vmatprep.subr.mxu0 %v1247_v2 }
 0x133   :  { %1042 = vmatpush3.msra.mxu0 %v549_v0  ;;  %v720_v0 = vld [vmem:[%s1584_s8 + $0x38] sm:$0xff] }
 0x134   :  { %1043 = vmatprep.subr.mxu0 %v1247_v2 }
 0x135   :  { %1044 = vmatpush3.msra.mxu0 %v548_v1  ;;  %v719_v1 = vld [vmem:[%s1584_s8 + $0x30] sm:$0xff] }
 0x136   :  { %1045 = vmatprep.subr.mxu0 %v1247_v2 }
 0x137   :  { %1046 = vmatpush3.msra.mxu0 %v547_v3  ;;  %v718_v3 = vld [vmem:[%s1584_s8 + $0x28] sm:$0xff] }
 0x138   :  { %1047 = vmatprep.subr.mxu0 %v1247_v2 }
 0x139   :  { %1048 = vmatpush3.msra.mxu0 %v546_v4  ;;  %v717_v4 = vld [vmem:[%s1584_s8 + $0x20] sm:$0xff] }
 0x13a   :  { %1049 = vmatprep.subr.mxu0 %v1247_v2 }
 0x13b   :  { %1050 = vmatpush3.msra.mxu0 %v545_v5  ;;  %v716_v5 = vld [vmem:[%s1584_s8 + $0x18] sm:$0xff] }
 0x13c   :  { %1051 = vmatprep.subr.mxu0 %v1247_v2 }
 0x13d   :  { %1052 = vmatpush3.msra.mxu0 %v544_v6  ;;  %v715_v6 = vld [vmem:[%s1584_s8 + $0x10] sm:$0xff] }
 0x13e   :  { %1053 = vmatprep.subr.mxu0 %v1247_v2 }
 0x13f   :  { %1054 = vmatpush3.msra.mxu0 %v543_v17 }
 0x140   :  { %1093 = vmatprep.subr.mxu0 %v1247_v2 }
 0x1e0   :  { %v200_v8 = vpop.f32.mrf.mxu0 }
 0x1e1   :  { %988 = vmatmul.mubr.f32.vlgmr.msra.gmra.mxu1 %v200_v8  ;;  %v297_v9 = vmul.f32 %v293_v7, %v200_v8  ;;  %v296_v12 = vmul.f32 %v292_v11, %v200_v8  ;;  %v295_v14 = vmul.f32 %v291_v13, %v200_v8  ;;  %v294_v16 = vmul.f32 %v290_v15, %v200_v8  ;;  %v714_v7 = vld [vmem:[%s1584_s8 + $0x8] sm:$0xff]  ;;  %v713_v8 = vld [vmem:[%s1584_s8] sm:$0xff]  ;;  %v704_v13 = vpop.permute.xlu1 %703 }
 0x1e2   :  { %v954_v10 = vpop.f32.mrf.mxu0  ;;  %998 = vmatprep.mubr.msk.f32.mxu1 %vm1250_vm0, %v1247_v2 }
 0x1e3   :  { %991 = vmatpush3.xpose.msra.mxu1 %v297_v9 }
 0x1e4   :  { %992 = vmatprep.subr.mxu1 %v1247_v2 }
 0x1e7   :  { %993 = vmatpush3.xpose.msra.mxu1 %v296_v12 }
 0x1e8   :  { %994 = vmatprep.subr.mxu1 %v1247_v2 }
 0x1eb   :  { %995 = vmatpush3.xpose.msra.mxu1 %v295_v14 }
 0x1ec   :  { %996 = vmatprep.subr.mxu1 %v1247_v2 }
 0x1ef   :  { %997 = vmatpush3.xpose.msra.mxu1 %v294_v16 }
 0x1f0   :  { %1001 = vmatprep.subr.mxu1 %v1247_v2 }
 0x2a1   :  { %v286_v18 = vpop.f32.mrf.mxu1 }
 0x2a2   :  { %999 = vmatmul.mubr.f32.vlgmr.msra.gmra.mxu1 %v286_v18  ;;  %1056 = vmatmul.mubr.f32.vlgmr.msra.gmra.mxu0 %v286_v18 }
 0x2a3   :  { %v989_v19 = vpop.f32.mrf.mxu1  ;;  %1009 = vmatprep.mubr.msk.f32.mxu1 %vm1250_vm0, %v1247_v2  ;;  %1125 = vmatprep.mubr.msk.f32.mxu0 %vm1250_vm0, %v1247_v2 }
 0x2a4   :  { %1002 = vmatpush3.msra.mxu1 %v377_v25  ;;  %1094 = vmatpush3.msra.mxu0 %v728_v56 }
 0x2a5   :  { %1003 = vmatprep.subr.mxu1 %v1247_v2  ;;  %1095 = vmatprep.subr.mxu0 %v1247_v2 }
 0x2a6   :  { %1004 = vmatpush3.msra.mxu1 %v376_v26  ;;  %1096 = vmatpush3.msra.mxu0 %v727_v57 }
 0x2a7   :  { %1005 = vmatprep.subr.mxu1 %v1247_v2  ;;  %1097 = vmatprep.subr.mxu0 %v1247_v2 }
 0x2a8   :  { %1006 = vmatpush3.msra.mxu1 %v375_v27  ;;  %1098 = vmatpush3.msra.mxu0 %v726_v58 }
 0x2a9   :  { %1007 = vmatprep.subr.mxu1 %v1247_v2  ;;  %1099 = vmatprep.subr.mxu0 %v1247_v2 }
 0x2aa   :  { %1008 = vmatpush3.msra.mxu1 %v374_v28  ;;  %1100 = vmatpush3.msra.mxu0 %v725_v59 }
 0x2ab   :  { %1012 = vmatprep.subr.mxu1 %v1247_v2  ;;  %1101 = vmatprep.subr.mxu0 %v1247_v2 }
 0x2ac   :  { %1102 = vmatpush3.msra.mxu0 %v724_v60 }
 0x2ad   :  { %1103 = vmatprep.subr.mxu0 %v1247_v2 }
 0x2ae   :  { %1104 = vmatpush3.msra.mxu0 %v723_v61 }
 0x2af   :  { %1105 = vmatprep.subr.mxu0 %v1247_v2 }
 0x2b0   :  { %1106 = vmatpush3.msra.mxu0 %v722_v62 }
 0x2b1   :  { %1107 = vmatprep.subr.mxu0 %v1247_v2 }
 0x2b2   :  { %1108 = vmatpush3.msra.mxu0 %v721_v63 }
 0x2b3   :  { %1109 = vmatprep.subr.mxu0 %v1247_v2 }
 0x2b4   :  { %1110 = vmatpush3.msra.mxu0 %v720_v0 }
 0x2b5   :  { %1111 = vmatprep.subr.mxu0 %v1247_v2 }
 0x2b6   :  { %1112 = vmatpush3.msra.mxu0 %v719_v1 }
 0x2b7   :  { %1113 = vmatprep.subr.mxu0 %v1247_v2 }
 0x2b8   :  { %1114 = vmatpush3.msra.mxu0 %v718_v3 }
 0x2b9   :  { %1115 = vmatprep.subr.mxu0 %v1247_v2 }
 0x2ba   :  { %1116 = vmatpush3.msra.mxu0 %v717_v4 }
 0x2bb   :  { %1117 = vmatprep.subr.mxu0 %v1247_v2 }
 0x2bc   :  { %1118 = vmatpush3.msra.mxu0 %v716_v5 }
 0x2bd   :  { %1119 = vmatprep.subr.mxu0 %v1247_v2 }
 0x2be   :  { %1120 = vmatpush3.msra.mxu0 %v715_v6 }
 0x2bf   :  { %1121 = vmatprep.subr.mxu0 %v1247_v2 }
 0x2c0   :  { %1122 = vmatpush3.msra.mxu0 %v714_v7 }
 0x2c1   :  { %1123 = vmatprep.subr.mxu0 %v1247_v2 }
 0x2c2   :  { %1124 = vmatpush3.msra.mxu0 %v713_v8 }
 0x362   :  { %v364_v20 = vpop.f32.mrf.mxu1  ;;  %v1462_v21 = vpop.f32.mrf.mxu0 }
 0x363   :  { %v368_v22 = vsel %vm112_vm5, %v364_v20, -inf }
 0x364   :  { %369 = vmax.xlane.f32.xlu0 %v368_v22  ;;  %v1000_v23 = vpop.f32.mrf.mxu1  ;;  %v1057_v24 = vpop.f32.mrf.mxu0 }
 0x3ed   :  { %v370_v29 = vpop.xlane.xlu0 %369 }
 0x3ee   :  { %v371_v30 = vsub.f32 %v364_v20, %v370_v29 }
 0x3f0   :  { %v372_v31 = vmul.f32 1.442695, %v371_v30 }
 0x3f2   :  { %1148 = vpow2.f32 %v372_v31 }
 0x3ff   :  { %v1149_v32 = vpop.eup %1148 }
 0x400   :  { %1010 = vmatmul.mubr.msk.f32.vlgmr.msra.gmra.mxu1 %vm112_vm5, %v1149_v32 }
 0x401   :  { %1013 = vmatpush3.msra.mxu1 %v297_v9  ;;  %1020 = vmatprep.mubr.msk.f32.mxu1 %vm1250_vm0, %v1247_v2 }
 0x402   :  { %1014 = vmatprep.subr.mxu1 %v1247_v2 }
 0x403   :  { %1015 = vmatpush3.msra.mxu1 %v296_v12 }
 0x404   :  { %1016 = vmatprep.subr.mxu1 %v1247_v2 }
 0x405   :  { %1017 = vmatpush3.msra.mxu1 %v295_v14 }
 0x406   :  { %1018 = vmatprep.subr.mxu1 %v1247_v2 }
 0x407   :  { %1019 = vmatpush3.msra.mxu1 %v294_v16 }
 0x408   :  { %1058 = vmatprep.subr.mxu1 %v1247_v2 }
 0x4c0   :  { %v447_v33 = vpop.f32.mrf.mxu1 }
 0x4c1   :  { %v451_v34 = vmax.f32 %v447_v33, 1.1754944e-38 }
 0x4c2   :  { %v1011_v35 = vpop.f32.mrf.mxu1 }
 0x4c3   :  { %1150 = vrcp.f32 %v451_v34 }
 0x4d0   :  { %v1151_v36 = vpop.eup %1150 }
 0x4d1   :  { %v453_v37 = vmul.f32 %v1151_v36, %v1149_v32 }
 0x4d3   :  { %1021 = vmatmul.mubr.msk.f32.vlgmr.msra.gmra.mxu1 %vm112_vm5, %v453_v37 }
 0x4d4   :  { %1059 = vmatpush3.msra.mxu1 %v542_v38  ;;  %1090 = vmatprep.mubr.msk.f32.mxu1 %vm1250_vm0, %v1247_v2 }
 0x4d5   :  { %1060 = vmatprep.subr.mxu1 %v1247_v2 }
 0x4d6   :  { %1061 = vmatpush3.msra.mxu1 %v541_v39 }
 0x4d7   :  { %1062 = vmatprep.subr.mxu1 %v1247_v2 }
 0x4d8   :  { %1063 = vmatpush3.msra.mxu1 %v540_v40 }
 0x4d9   :  { %1064 = vmatprep.subr.mxu1 %v1247_v2 }
 0x4da   :  { %1065 = vmatpush3.msra.mxu1 %v539_v41 }
 0x4db   :  { %1066 = vmatprep.subr.mxu1 %v1247_v2 }
 0x4dc   :  { %1067 = vmatpush3.msra.mxu1 %v538_v42 }
 0x4dd   :  { %1068 = vmatprep.subr.mxu1 %v1247_v2 }
 0x4de   :  { %1069 = vmatpush3.msra.mxu1 %v537_v43 }
 0x4df   :  { %1070 = vmatprep.subr.mxu1 %v1247_v2 }
 0x4e0   :  { %1071 = vmatpush3.msra.mxu1 %v536_v44 }
 0x4e1   :  { %1072 = vmatprep.subr.mxu1 %v1247_v2 }
 0x4e2   :  { %1073 = vmatpush3.msra.mxu1 %v535_v45 }
 0x4e3   :  { %1074 = vmatprep.subr.mxu1 %v1247_v2 }
 0x4e4   :  { %1075 = vmatpush3.msra.mxu1 %v534_v46 }
 0x4e5   :  { %1076 = vmatprep.subr.mxu1 %v1247_v2 }
 0x4e6   :  { %1077 = vmatpush3.msra.mxu1 %v533_v47 }
 0x4e7   :  { %1078 = vmatprep.subr.mxu1 %v1247_v2 }
 0x4e8   :  { %1079 = vmatpush3.msra.mxu1 %v532_v48 }
 0x4e9   :  { %1080 = vmatprep.subr.mxu1 %v1247_v2 }
 0x4ea   :  { %1081 = vmatpush3.msra.mxu1 %v531_v49 }
 0x4eb   :  { %1082 = vmatprep.subr.mxu1 %v1247_v2 }
 0x4ec   :  { %1083 = vmatpush3.msra.mxu1 %v530_v50 }
 0x4ed   :  { %1084 = vmatprep.subr.mxu1 %v1247_v2 }
 0x4ee   :  { %1085 = vmatpush3.msra.mxu1 %v529_v51 }
 0x4ef   :  { %1086 = vmatprep.subr.mxu1 %v1247_v2 }
 0x4f0   :  { %1087 = vmatpush3.msra.mxu1 %v528_v52 }
 0x4f1   :  { %1088 = vmatprep.subr.mxu1 %v1247_v2  ;;  %v729_v2 = vld [vmem:[%s1585_s9] sm:$0x1] }
 0x4f2   :  { %1089 = vmatpush3.msra.mxu1 %v527_v53 }
 0x593   :  { %v523_v54 = vpop.f32.mrf.mxu1 }
 0x594   :  { %1091 = vmatmul.mubr.f32.vlgmr.msra.gmra.mxu1 %v523_v54 }
 0x595   :  { %v1022_v55 = vpop.f32.mrf.mxu1 }
 0x654   :  { %v695_v9 = vpop.f32.mrf.mxu1 }
 0x655   :  { %v696_v10 = vadd.f32 %v695_v9, %v1462_v21 }
 0x656   :  { %v1092_v11 = vpop.f32.mrf.mxu1 }
 0x657   :  { %1152 = vtanh.f32 %v696_v10 }
 0x664   :  { %v1153_v12 = vpop.eup %1152 }
 0x665   :  { %v706_v14 = vmul.f32 %v1153_v12, %v704_v13 }
 0x667   :  { %v707_v15 = vrot.slane %v706_v14, 4 }
 0x669   :  { %v708_v16 = vadd.f32 %v707_v15, %v706_v14 }
 0x66b   :  { %v709_v17 = vrot.slane %v708_v16, 2 }
 0x66d   :  { %v710_v18 = vadd.f32 %v709_v17, %v708_v16 }
 0x66f   :  { %v711_v19 = vrot.slane %v710_v18, 1 }
 0x671   :  { %v712_v20 = vadd.f32 %v711_v19, %v710_v18 }
 0x673   :  { %1126 = vmatmul.mubr.f32.vlgmr.msra.gmra.mxu0 %v712_v20 }
 0x733   :  { %v796_v22 = vpop.f32.mrf.mxu0 }
 0x734   :  { %v797_v21 = vadd.f32 %v796_v22, %v729_v2 }
 0x735   :  { %v1127_v23 = vpop.f32.mrf.mxu0 }
 0x736   :  { %801 = vst.msk [vmem:[#allocation8] sm:$0x1] %vm800_vm8, %v797_v21 }
 0x737   :  { %1225 = shalt.err (!%p1222_p5)
}
 0x738   :  { %811 = dma.vmem_to_hbm [thread:$0]  %s809_s15, 16, %s1586_s10, [#allocation4]  }
 0x739   :  { %1238 = dma.done.wait [#allocation4], 16  }
 0x73a   :  { %1239 = vsyncadd [#allocation4], 4294967280 }
 0x73b   :  { %815 = vsyncpa [#allocation3], 1 }
 0x73c   :  { %816 = vsyncpa [#allocation6], 1 }
 0x73d   :  { %817 = vsyncpa [#allocation4], 1 }

</bundles_post_ra>
